<compile_context>
chip_gen: v5e
topology: v5e:2x2
jax: 0.10.0
libtpu: 0.0.40
codegen_flags: <defaults>
</compile_context>

<pallas_src>
import functools

import jax
import jax.numpy as jnp
from jax.experimental import pallas as pl
from jax.experimental.pallas import tpu as pltpu

_LANES = 128
_SUBLANES = 8


def _round_up(x, m):
    return ((x + m - 1) // m) * m


def _kd_partial_kernel(stu_ref, tea1_ref, tea2_ref, out_ref, *, inv_t: float):
    """Per-block (TB rows) partial KL(teacher || student) sum, un-normalized.

    out_ref is a (1, 8, 128) lane-dense tile filled with the block's partial sum
    (all elements equal), so the store is an unmasked full-tile vst.
    """
    stu = stu_ref[...].astype(jnp.float32)
    tea1 = tea1_ref[...].astype(jnp.float32)
    tea2 = tea2_ref[...].astype(jnp.float32)

    # TODO(synk): scores_dmutde_fusion source is not shipped with the module;
    # implemented here as the element-wise mean of the two teacher score rows.
    tea = 0.5 * (tea1 + tea2)

    s = stu * inv_t
    t = tea * inv_t

    # log_softmax(student / T) along the candidate (lane) axis.
    s_shift = s - jnp.max(s, axis=-1, keepdims=True)
    s_lse = jnp.log(jnp.sum(jnp.exp(s_shift), axis=-1, keepdims=True))
    log_p_s = s_shift - s_lse

    # Teacher softmax statistics along the candidate axis.
    t_shift = t - jnp.max(t, axis=-1, keepdims=True)
    t_exp = jnp.exp(t_shift)
    t_sum = jnp.sum(t_exp, axis=-1, keepdims=True)
    log_t_sum = jnp.log(t_sum)

    # KL factored so only a per-row [TB, 1] reciprocal is needed:
    #   kl_row = (1 / t_sum) * sum_j t_exp_j * (t_shift_j - log(t_sum) - log_p_s_j)
    num = jnp.sum(t_exp * (t_shift - log_t_sum - log_p_s), axis=-1, keepdims=True)
    row_kl = num * pl.reciprocal(t_sum, approx=True)   # [TB, 1]
    partial = jnp.sum(row_kl)

    out_ref[...] = jnp.full(out_ref.shape, partial, dtype=jnp.float32)


def imitation_dual_teacher_loss(stu_dis, tea_dis1, tea_dis2, *, temperature=2.0,
                                prefix="", block_rows=None):
    """JAX/Pallas equivalent of Imitation_DualTeacher.forward (forward only)."""
    assert stu_dis.shape == tea_dis1.shape == tea_dis2.shape
    assert stu_dis.ndim == 2
    B, N = stu_dis.shape
    itemsize = jnp.dtype(stu_dis.dtype).itemsize

    # ---- pick a batch tile: 3 inputs x 2 pipeline buffers under ~8 MiB -------
    if block_rows is None:
        budget = 8 * 1024 * 1024
        block_rows = (budget // (3 * 2 * N * itemsize)) // _SUBLANES * _SUBLANES
        block_rows = min(max(block_rows, _SUBLANES), 512)
    block_rows = max(_SUBLANES, (block_rows // _SUBLANES) * _SUBLANES)
    block_rows = min(block_rows, _round_up(B, _SUBLANES))

    bp = _round_up(B, block_rows)
    if bp != B:
        # Zero rows contribute exactly 0 to the KL sum (uniform || uniform),
        # and we divide by the original B below, so zero-padding is exact.
        pad = ((0, bp - B), (0, 0))
        stu_dis = jnp.pad(stu_dis, pad)
        tea_dis1 = jnp.pad(tea_dis1, pad)
        tea_dis2 = jnp.pad(tea_dis2, pad)

    grid = bp // block_rows

    # Explicit scoped-VMEM budget: pipelined input buffers + f32 temp headroom.
    vmem_bytes = 3 * 2 * block_rows * N * itemsize
    vmem_bytes += 10 * block_rows * N * 4
    vmem_bytes += 2 * 1024 * 1024
    vmem_bytes = min(int(vmem_bytes), 64 * 1024 * 1024)

    kernel = functools.partial(_kd_partial_kernel, inv_t=1.0 / float(temperature))

    partials = pl.pallas_call(
        kernel,
        out_shape=jax.ShapeDtypeStruct((grid, _SUBLANES, _LANES), jnp.float32),
        grid_spec=pltpu.PrefetchScalarGridSpec(
            num_scalar_prefetch=0,
            grid=(grid,),
            in_specs=[
                pl.BlockSpec((block_rows, N), lambda i: (i, 0)),
                pl.BlockSpec((block_rows, N), lambda i: (i, 0)),
                pl.BlockSpec((block_rows, N), lambda i: (i, 0)),
            ],
            out_specs=pl.BlockSpec((1, _SUBLANES, _LANES), lambda i: (i, 0, 0)),
        ),
        compiler_params=pltpu.CompilerParams(
            dimension_semantics=("parallel",),   # row-blocks are independent
            vmem_limit_bytes=vmem_bytes,
        ),
    )(stu_dis, tea_dis1, tea_dis2)

    scale = (float(temperature) * float(temperature)) / float(B)
    loss = jnp.sum(partials[:, 0, 0]) * scale

    # TODO(synk): no custom_vjp provided (forward only); training would need
    # d/dstu = (softmax(stu/T) - softmax(tea/T)) * T / B.
    loss_record = {"soft_loss" + prefix: loss}   # device array; no host sync
    return loss, loss_record


def _reference_loss(stu, tea1, tea2, temperature=2.0):
    """Pure-JAX reference for correctness checking."""
    tea = 0.5 * (tea1 + tea2)
    s = stu / temperature
    t = tea / temperature
    log_p_s = jax.nn.log_softmax(s, axis=-1)
    p_t = jax.nn.softmax(t, axis=-1)
    log_p_t = jax.nn.log_softmax(t, axis=-1)
    kl = jnp.sum(p_t * (log_p_t - log_p_s))
    return kl / stu.shape[0] * temperature * temperature


if __name__ == "__main__":
    TEMPERATURE = 2.0
    key = jax.random.PRNGKey(0)
    k1, k2, k3, k4, k5, k6 = jax.random.split(key, 6)

    # Test 1: multi-block grid (3 row-blocks of 8), KGC-like candidate axis.
    B1, N1 = 24, 256
    stu1 = jax.random.normal(k1, (B1, N1), dtype=jnp.float32)
    t1a = jax.random.normal(k2, (B1, N1), dtype=jnp.float32)
    t1b = jax.random.normal(k3, (B1, N1), dtype=jnp.float32)
    loss1, rec1 = imitation_dual_teacher_loss(
        stu1, t1a, t1b, temperature=TEMPERATURE, block_rows=8)
    loss1 = jax.block_until_ready(loss1)
    ref1 = _reference_loss(stu1, t1a, t1b, TEMPERATURE)
    assert jnp.allclose(loss1, ref1, rtol=2e-3, atol=1e-4), (loss1, ref1)

    # Test 2: batch not a multiple of the sublane tile (exercises zero-padding).
    B2, N2 = 10, 128
    stu2 = jax.random.normal(k4, (B2, N2), dtype=jnp.float32)
    t2a = jax.random.normal(k5, (B2, N2), dtype=jnp.float32)
    t2b = jax.random.normal(k6, (B2, N2), dtype=jnp.float32)
    loss2, _ = imitation_dual_teacher_loss(stu2, t2a, t2b, temperature=TEMPERATURE)
    loss2 = jax.block_until_ready(loss2)
    ref2 = _reference_loss(stu2, t2a, t2b, TEMPERATURE)
    assert jnp.allclose(loss2, ref2, rtol=2e-3, atol=1e-4), (loss2, ref2)

    print("KERNEL_OK")
</pallas_src>

<mosaic_0001>
module attributes {stable_mosaic.version = 11 : i64} {
  func.func @_kd_partial_kernel(%arg0: i32, %arg1: memref<8x256xf32, #tpu.memory_space<vmem>>, %arg2: memref<8x256xf32, #tpu.memory_space<vmem>>, %arg3: memref<8x256xf32, #tpu.memory_space<vmem>>, %arg4: memref<1x8x128xf32, #tpu.memory_space<vmem>>) attributes {dimension_semantics = [#tpu.dimension_semantics<parallel>], iteration_bounds = array<i64: 3>, scalar_prefetch = 0 : i64, scratch_operands = 0 : i64, tpu.core_type = #tpu.core_type<tc>, window_params = [{transform_indices = @transform_0, window_bounds = array<i64: 8, 256>}, {transform_indices = @transform_1, window_bounds = array<i64: 8, 256>}, {transform_indices = @transform_2, window_bounds = array<i64: 8, 256>}, {transform_indices = @transform_3, window_bounds = array<i64: 1, 8, 128>}]} {
    %c0 = arith.constant 0 : index
    %c0_0 = arith.constant 0 : index
    %0 = vector.load %arg1[%c0, %c0_0] : memref<8x256xf32, #tpu.memory_space<vmem>>, vector<8x256xf32>
    %c0_1 = arith.constant 0 : index
    %c0_2 = arith.constant 0 : index
    %1 = vector.load %arg2[%c0_1, %c0_2] : memref<8x256xf32, #tpu.memory_space<vmem>>, vector<8x256xf32>
    %c0_3 = arith.constant 0 : index
    %c0_4 = arith.constant 0 : index
    %2 = vector.load %arg3[%c0_3, %c0_4] : memref<8x256xf32, #tpu.memory_space<vmem>>, vector<8x256xf32>
    %3 = arith.addf %1, %2 : vector<8x256xf32>
    %cst = arith.constant 5.000000e-01 : f32
    %4 = vector.broadcast %cst : f32 to vector<8x256xf32>
    %5 = arith.mulf %4, %3 : vector<8x256xf32>
    %cst_5 = arith.constant 5.000000e-01 : f32
    %6 = vector.broadcast %cst_5 : f32 to vector<8x256xf32>
    %7 = arith.mulf %0, %6 : vector<8x256xf32>
    %cst_6 = arith.constant 5.000000e-01 : f32
    %8 = vector.broadcast %cst_6 : f32 to vector<8x256xf32>
    %9 = arith.mulf %5, %8 : vector<8x256xf32>
    %cst_7 = arith.constant dense<0xFF800000> : vector<8xf32>
    %10 = vector.multi_reduction <maximumf>, %7, %cst_7 [1] : vector<8x256xf32> to vector<8xf32>
    %11 = vector.shape_cast %10 : vector<8xf32> to vector<8x1xf32>
    %12 = vector.broadcast %11 : vector<8x1xf32> to vector<8x256xf32>
    %13 = arith.subf %7, %12 : vector<8x256xf32>
    %14 = math.exp %13 : vector<8x256xf32>
    %cst_8 = arith.constant dense<0.000000e+00> : vector<8xf32>
    %15 = vector.multi_reduction <add>, %14, %cst_8 [1] : vector<8x256xf32> to vector<8xf32>
    %16 = vector.shape_cast %15 : vector<8xf32> to vector<8x1xf32>
    %17 = math.log %16 : vector<8x1xf32>
    %18 = vector.broadcast %17 : vector<8x1xf32> to vector<8x256xf32>
    %19 = arith.subf %13, %18 : vector<8x256xf32>
    %cst_9 = arith.constant dense<0xFF800000> : vector<8xf32>
    %20 = vector.multi_reduction <maximumf>, %9, %cst_9 [1] : vector<8x256xf32> to vector<8xf32>
    %21 = vector.shape_cast %20 : vector<8xf32> to vector<8x1xf32>
    %22 = vector.broadcast %21 : vector<8x1xf32> to vector<8x256xf32>
    %23 = arith.subf %9, %22 : vector<8x256xf32>
    %24 = math.exp %23 : vector<8x256xf32>
    %cst_10 = arith.constant dense<0.000000e+00> : vector<8xf32>
    %25 = vector.multi_reduction <add>, %24, %cst_10 [1] : vector<8x256xf32> to vector<8xf32>
    %26 = vector.shape_cast %25 : vector<8xf32> to vector<8x1xf32>
    %27 = math.log %26 : vector<8x1xf32>
    %28 = vector.broadcast %27 : vector<8x1xf32> to vector<8x256xf32>
    %29 = arith.subf %23, %28 : vector<8x256xf32>
    %30 = arith.subf %29, %19 : vector<8x256xf32>
    %31 = arith.mulf %24, %30 : vector<8x256xf32>
    %cst_11 = arith.constant dense<0.000000e+00> : vector<8xf32>
    %32 = vector.multi_reduction <add>, %31, %cst_11 [1] : vector<8x256xf32> to vector<8xf32>
    %33 = vector.shape_cast %32 : vector<8xf32> to vector<8x1xf32>
    %34 = tpu.reciprocal %26 {approx = true} : vector<8x1xf32> -> vector<8x1xf32>
    %35 = arith.mulf %33, %34 : vector<8x1xf32>
    %36 = vector.shape_cast %35 : vector<8x1xf32> to vector<1x8x1xf32>
    %cst_12 = arith.constant dense<0.000000e+00> : vector<1xf32>
    %37 = vector.multi_reduction <add>, %36, %cst_12 [1, 2] : vector<1x8x1xf32> to vector<1xf32>
    %38 = vector.shape_cast %37 : vector<1xf32> to vector<1x1x1xf32>
    %39 = vector.extract %38[0, 0, 0] : f32 from vector<1x1x1xf32>
    %40 = vector.broadcast %39 : f32 to vector<1x8x128xf32>
    %c0_13 = arith.constant 0 : index
    %c0_14 = arith.constant 0 : index
    %c0_15 = arith.constant 0 : index
    %41 = vector.load %arg4[%c0_13, %c0_14, %c0_15] : memref<1x8x128xf32, #tpu.memory_space<vmem>>, vector<1x8x128xf32>
    tpu.vector_store %arg4[%c0_13, %c0_14, %c0_15], %40 {strides = array<i32>} : memref<1x8x128xf32, #tpu.memory_space<vmem>>, vector<1x8x128xf32>,
    return
  }
  func.func @transform_0(%arg0: i32) -> (i32, i32) {
    %c0_i32 = arith.constant 0 : i32
    %c0_i32_0 = arith.constant 0 : i32
    return %arg0, %c0_i32 : i32, i32
  }
  func.func @transform_1(%arg0: i32) -> (i32, i32) {
    %c0_i32 = arith.constant 0 : i32
    %c0_i32_0 = arith.constant 0 : i32
    return %arg0, %c0_i32 : i32, i32
  }
  func.func @transform_2(%arg0: i32) -> (i32, i32) {
    %c0_i32 = arith.constant 0 : i32
    %c0_i32_0 = arith.constant 0 : i32
    return %arg0, %c0_i32 : i32, i32
  }
  func.func @transform_3(%arg0: i32) -> (i32, i32, i32) {
    %c0_i32 = arith.constant 0 : i32
    %c0_i32_0 = arith.constant 0 : i32
    %c0_i32_1 = arith.constant 0 : i32
    return %arg0, %c0_i32, %c0_i32_0 : i32, i32, i32
  }
}

</mosaic_0001>

<bundles_post_ra>
// kernel: tpu_custom_call.1
= control target key start
LH: loop header
LB: loop body
LE: loop exit
PB: predicated region body
PF: predicated region fallthrough
CT: control target
= control target key end

     0   :  { %s920_s0 = inlined_call_operand.hbm [shape: f32[24,256], index: 0, kind: input, shape index: {}]   ;;  %s921_s1 = inlined_call_operand.hbm [shape: f32[24,256], index: 1, kind: input, shape index: {}]   ;;  %s922_s2 = inlined_call_operand.hbm [shape: f32[24,256], index: 2, kind: input, shape index: {}]   ;;  %s923_s3 = inlined_call_operand.hbm [shape: f32[3,8,128], index: 3, kind: output, shape index: {}]  }
   0x1   :  { %924 = sst [smem:[#allocation13_spill]] %s921_s1 }
   0x2   :  { %8 = vsyncpa [#allocation3], 0 }
   0x3   :  { %10 = vsyncpa [#allocation3 + $0x1], 0 }
   0x4   :  { %11 = vsyncpa [#allocation6], 0 }
   0x5   :  { %13 = vsyncpa [#allocation6 + $0x1], 0 }
   0x6   :  { %14 = vsyncpa [#allocation4], 0 }
   0x7   :  { %16 = vsyncpa [#allocation4 + $0x1], 0  ;;  %s741_s12 = smov 0   ;;  %s743_s13 = smov 0  }
   0x8   :  { %s745_s14 = smov 0   ;;  %s747_s15 = smov 0  }
   0x9 LB: > { %s762_s16 = sadd.s32 4294967295, %s719_s15   ;;  %s463_s17 = sadd.s32 4294967294, %s719_s15   ;;  %s719_s15 = sphi %s747_s15, %s936_s15   ;;  %s715_s14 = sphi %s745_s14, %s935_s14   ;;  %s711_s13 = sphi %s743_s13, %s934_s13   ;;  %s707_s12 = sphi %s741_s12, %s933_s12  }
   0xa   : > { %s766_s18 = sadd.s32 1, %s719_s15   ;;  %s29_s19 = sadd.s32 1, %s715_s14 }
   0xb   : > { %s26_s20 = ssub.s32 %s719_s15, %s766_s18  ;;  %p36_p0 = scmp.ne.s32.totalorder %s715_s14, %s711_s13 }
   0xc   : > { %p27_p1 = scmp.eq.s32.totalorder %s26_s20, 0  ;;  %p37_p2 = scmp.eq.s32.totalorder %s719_s15, 0 }
   0xd   : > { %p42_p3 = scmp.ne.s32.totalorder %s711_s13, %s707_s12  ;;  %p43_p4 = scmp.eq.s32.totalorder %s762_s16, 0 }
   0xe   : > { %s778_s21 = scalar_select %p27_p1, %s715_s14, %s29_s19  }
   0xf   : > { %p38_p5 = por %p37_p2, %p36_p0  ;;  %p780_p6 = por %p43_p4, %p42_p3 }
  0x10   : > { %925 = sst [smem:[#allocation12_spill]] %s778_s21  ;;  %p118_p7 = scmp.eq.s32.totalorder %s762_s16, 2 }
  0x11   : > { %p124_p8 = scmp.eq.s32.totalorder %s463_s17, 2  ;;  %p511_p9 = scmp.lt.s32.totalorder %s719_s15, 3 }
  0x12   : > { %p786_p10 = por %p118_p7, %p36_p0  ;;  %s144_s25 = sand.u32 1, %s715_s14  }
  0x13   : > { %p790_p11 = por %p124_p8, %p42_p3  ;;  %s796_s26 = sshll.u32 %s719_s15, 4 }
  0x14   : > { %s800_s27 = sshll.u32 %s144_s25, 4  ;;  %p802_p12 = pnand %p511_p9, %p38_p5 }
  0x15   : > { %s164_s29 = sand.u32 1, %s719_s15   ;;  %s930_s1 = sld [smem:[#allocation13_spill]] }
  0x16   : > { %s168_s6 = scalar_lea.vmem [#allocation5], %s800_s27  ;;  %p475_p13 = scmp.ge.s32.totalorder %s719_s15, 1 }
  0x17   : > { %s177_s7 = sshll.u32 %s168_s6, 4  ;;  %s813_s9 = scalar_lea.sflag [#allocation6], %s164_s29  ;;  %s178_s7 = int_to_ptr.vmem [resolvable:$true] %s177_s7 }
  0x18   : > { %p563_p1 = pneg %p802_p12 }
  0x1b   : > { %s173_s5 = scalar_lea.hbm %s930_s1, %s796_s26  ;;  %s566_s20 = scalar_lea.hbm %s930_s1, 48 }
  0x1c   : > { %s175_s8 = sshll.u32 %s173_s5, 4  ;;  %s176_s8 = int_to_ptr.hbm [resolvable:$true] %s175_s8 }
  0x1d   : > { %s559_s10 = sshra.s32 %s176_s8, 4  ;;  %s560_s10 = int_to_ptr.hbm [resolvable:$true] %s559_s10 }
  0x1e   : > { %s561_s11 = scalar_lea.hbm %s560_s10, 16  ;;  %p567_p4 = scmp.lt.s32.totalorder %s560_s10, %s930_s1 }
  0x1f   : > { %p562_p0 = scmp.ne.s32.totalorder %s560_s10, %s561_s11  ;;  %p568_p5 = scmp.lt.s32.totalorder %s566_s20, %s561_s11 }
  0x21   : > { %p564_p2 = pnand %p563_p1, %p562_p0  ;;  %p569_p7 = por %p568_p5, %p567_p4 }
  0x23   : > { %p565_p3 = pneg %p564_p2 }
  0x25   : > { %p570_p8 = pnand %p569_p7, %p565_p3 }
  0x27   : > { %573 = shalt.err (!%p570_p8)
}
  0x28   : > { %503 = dma.hbm_to_vmem [thread:$0]  (!%p802_p12), %s176_s8, 256, %s178_s7, %s813_s9  }
  0x29   : > { %p202_p9 = scmp.lt.s32.totalorder %s719_s15, 4  ;;  %s153_s6 = scalar_lea.hbm %s920_s0, %s796_s26 }
  0x2a   : > { %s155_s11 = sshll.u32 %s153_s6, 4  ;;  %s148_s17 = scalar_lea.vmem [#allocation2], %s800_s27  ;;  %s156_s11 = int_to_ptr.hbm [resolvable:$true] %s155_s11 }
  0x2b   : > { %p836_p0 = pnand %p475_p13, %p202_p9  ;;  %s157_s19 = sshll.u32 %s148_s17, 4  ;;  %s158_s19 = int_to_ptr.vmem [resolvable:$true] %s157_s19 }
  0x2c   : > { %s145_s20 = scalar_lea.sflag [#allocation3], %s144_s25  ;;  %s589_s30 = sshra.s32 %s156_s11, 4  ;;  %s590_s30 = int_to_ptr.hbm [resolvable:$true] %s589_s30 }
  0x2d   : > { %s591_s7 = scalar_lea.hbm %s590_s30, 16  ;;  %s596_s29 = scalar_lea.hbm %s920_s0, 48 }
  0x2e   : > { %p592_p2 = scmp.ne.s32.totalorder %s590_s30, %s591_s7  ;;  %p597_p13 = scmp.lt.s32.totalorder %s590_s30, %s920_s0 }
  0x2f   : > { %p598_p5 = scmp.lt.s32.totalorder %s596_s29, %s591_s7 }
  0x30   : > { %p594_p3 = pnand %p592_p2, %p563_p1 }
  0x31   : > { %p599_p7 = por %p598_p5, %p597_p13 }
  0x32   : > { %p595_p4 = pneg %p594_p3 }
  0x34   : > { %p600_p8 = pnand %p599_p7, %p595_p4 }
  0x36   : > { %603 = shalt.err (!%p600_p8)
}
  0x37   : > { %500 = dma.hbm_to_vmem [thread:$0]  (!%p802_p12), %s156_s11, 256, %s158_s19, %s145_s20  }
  0x38   : > { %s193_s1 = scalar_lea.hbm %s922_s2, %s796_s26  ;;  %s188_s8 = scalar_lea.vmem [#allocation7], %s800_s27 }
  0x39   : > { %s197_s4 = sshll.u32 %s188_s8, 4  ;;  %s195_s21 = sshll.u32 %s193_s1, 4  ;;  %s198_s4 = int_to_ptr.vmem [resolvable:$true] %s197_s4  ;;  %s196_s21 = int_to_ptr.hbm [resolvable:$true] %s195_s21 }
  0x3a   : > { %s619_s30 = sshra.s32 %s196_s21, 4  ;;  %s626_s11 = scalar_lea.hbm %s922_s2, 48  ;;  %s620_s30 = int_to_ptr.hbm [resolvable:$true] %s619_s30 }
  0x3b   : > { %s621_s7 = scalar_lea.hbm %s620_s30, 16  ;;  %p627_p4 = scmp.lt.s32.totalorder %s620_s30, %s922_s2 }
  0x3c   : > { %p622_p9 = scmp.ne.s32.totalorder %s620_s30, %s621_s7  ;;  %p628_p13 = scmp.lt.s32.totalorder %s626_s11, %s621_s7 }
  0x3e   : > { %p624_p2 = pnand %p622_p9, %p563_p1  ;;  %p629_p5 = por %p628_p13, %p627_p4 }
  0x40   : > { %p625_p3 = pneg %p624_p2 }
  0x42   : > { %p630_p7 = pnand %p629_p5, %p625_p3 }
  0x44   : > { %633 = shalt.err (!%p630_p7)
}
  0x45   : > { %506 = dma.hbm_to_vmem [thread:$0]  (!%p802_p12), %s196_s21, 256, %s198_s4, %s813_s9  }
  0x46   : > { %206 = sbr.rel (%p836_p0) target bundleno = 656 (0x290), region = 32  ;;  %s874_s1 = sand.u32 (!%p836_p0), 1, %s711_s13  }
  0x47   : > { %s476_s26 = sshll.u32 (!%p836_p0), %s874_s1, 4  ;;  %s209_s27 = scalar_lea.sflag (!%p836_p0), [#allocation3], %s874_s1 }
  0x48   : > { %s212_s6 = scalar_lea.vmem (!%p836_p0), [#allocation2], %s476_s26 }
  0x4b   : > { %694 = dma.done.wait (%p780_p6), %s209_s27, 256  }
  0x4c   : > { %696 = vsyncadd (%p780_p6), %s209_s27, 4294967040  ;;  %s218_s21 = sand.u32 1, %s762_s16   ;;  %s222_s9 = scalar_lea.vmem [#allocation5], %s476_s26 }
  0x4d   : > { %s219_s28 = scalar_lea.sflag [#allocation6], %s218_s21 }
  0x4e   : > { %698 = dma.done.wait (%p780_p6), %s219_s28, 512  }
  0x4f   : > { %700 = vsyncadd (%p780_p6), %s219_s28, 4294966784  ;;  %v266_v0 = vld [vmem:[%s212_s6] sm:$0xff]  ;;  %v267_v1 = vld [vmem:[%s212_s6 + $0x8] sm:$0xff]  ;;  %s232_s10 = scalar_lea.vmem [#allocation7], %s476_s26  ;;  %vm321_vm0 = vcmask 7168   ;;  %s479_s22 = sshll.u32 %s874_s1, 3 }
  0x50   : > { %v268_v2 = vld [vmem:[%s222_s9] sm:$0xff]  ;;  %v276_v3 = vmul.f32 0.5, %v266_v0  ;;  %v277_v4 = vmul.f32 0.5, %v267_v1  ;;  %v269_v5 = vld [vmem:[%s222_s9 + $0x8] sm:$0xff]  ;;  %s481_s25 = sshll.u32 %s762_s16, 3  ;;  %s265_s30 = scalar_lea.vmem [#allocation8], %s479_s22 }
  0x51   : > { %v270_v6 = vld [vmem:[%s232_s10] sm:$0xff]  ;;  %v271_v7 = vld [vmem:[%s232_s10 + $0x8] sm:$0xff]  ;;  %s345_s4 = scalar_lea.hbm %s923_s3, %s481_s25  ;;  %s347_s7 = sshll.u32 %s265_s30, 4  ;;  %s348_s7 = int_to_ptr.vmem [resolvable:$true] %s347_s7 }
  0x52   : > { %v272_v8 = vadd.f32 %v270_v6, %v268_v2  ;;  %v273_v9 = vadd.f32 %v271_v7, %v269_v5  ;;  %v280_v10 = vmax.f32 %v276_v3, %v277_v4  ;;  %s349_s29 = sshll.u32 %s345_s4, 4  ;;  %s335_s11 = scalar_lea.sflag [#allocation4], %s874_s1  ;;  %s350_s29 = int_to_ptr.hbm [resolvable:$true] %s349_s29 }
  0x53   : > { %s663_s19 = sshra.s32 %s350_s29, 4  ;;  %s669_s27 = scalar_lea.hbm %s923_s3, 24  ;;  %s664_s19 = int_to_ptr.hbm [resolvable:$true] %s663_s19 }
  0x54   : > { %v274_v11 = vmul.f32 0.5, %v272_v8  ;;  %v275_v12 = vmul.f32 0.5, %v273_v9  ;;  %281 = vmax.xlane.f32.xlu0 %v280_v10  ;;  %s665_s20 = scalar_lea.hbm %s664_s19, 8  ;;  %p670_p0 = scmp.lt.s32.totalorder %s664_s19, %s923_s3 }
  0x55   : > { %p666_p6 = scmp.ne.s32.totalorder %s664_s19, %s665_s20  ;;  %p671_p8 = scmp.lt.s32.totalorder %s669_s27, %s665_s20 }
  0x56   : > { %v278_v13 = vmul.f32 0.5, %v274_v11  ;;  %v279_v14 = vmul.f32 0.5, %v275_v12 }
  0x57   : > { %p667_p12 = pnand %p666_p6, %p786_p10  ;;  %p672_p9 = por %p671_p8, %p670_p0 }
  0x58   : > { %v296_v15 = vmax.f32 %v278_v13, %v279_v14 }
  0x59   : > { %p668_p1 = pneg %p667_p12 }
  0x5b   : > { %p673_p2 = pnand %p672_p9, %p668_p1 }
  0x5c   : > { %297 = vmax.xlane.f32.xlu0 %v296_v15 }
  0xc7   : > { %v282_v16 = vpop.xlane.xlu0 %281 }
  0xc8   : > { %v283_v17 = vsub.f32 %v276_v3, %v282_v16  ;;  %v284_v18 = vsub.f32 %v277_v4, %v282_v16 }
  0xca   : > { %v285_v19 = vmul.f32 1.442695, %v283_v17  ;;  %v287_v20 = vmul.f32 1.442695, %v284_v18 }
  0xcc   : > { %545 = vpow2.f32 %v285_v19 }
  0xcd   : > { %547 = vpow2.f32 %v287_v20 }
  0xcf   : > { %v298_v21 = vpop.xlane.xlu0 %297 }
  0xd0   : > { %v299_v22 = vsub.f32 %v278_v13, %v298_v21  ;;  %v300_v23 = vsub.f32 %v279_v14, %v298_v21 }
  0xd2   : > { %v546_v24 = vpop.eup %545  ;;  %v301_v25 = vmul.f32 1.442695, %v299_v22  ;;  %v303_v26 = vmul.f32 1.442695, %v300_v23 }
  0xd3   : > { %v548_v27 = vpop.eup %547 }
  0xd4   : > { %549 = vpow2.f32 %v301_v25  ;;  %v289_v28 = vadd.f32 %v548_v27, %v546_v24 }
  0xd5   : > { %551 = vpow2.f32 %v303_v26 }
  0xd6   : > { %290 = vadd.xlane.f32.xlu1 %v289_v28 }
  0xda   : > { %v550_v29 = vpop.eup %549 }
  0xdb   : > { %v552_v30 = vpop.eup %551 }
  0xdc   : > { %v305_v31 = vadd.f32 %v552_v30, %v550_v29 }
  0xde   : > { %306 = vadd.xlane.f32.xlu1 %v305_v31 }
 0x149   : > { %v291_v32 = vpop.xlane.xlu1 %290 }
 0x14a   : > { %553 = vlog2.f32 %v291_v32 }
 0x150   : > { %v554_v34 = vpop.eup %553 }
 0x151   : > { %v307_v33 = vpop.xlane.xlu1 %306  ;;  %v293_v35 = vmul.f32 0.6931472, %v554_v34 }
 0x152   : > { %555 = vlog2.f32 %v307_v33 }
 0x153   : > { %v294_v38 = vsub.f32 %v283_v17, %v293_v35  ;;  %v295_v39 = vsub.f32 %v284_v18, %v293_v35  ;;  %557 = vrcp.f32 %v307_v33 }
 0x158   : > { %v556_v36 = vpop.eup %555 }
 0x159   : > { %v309_v37 = vmul.f32 0.6931472, %v556_v36  ;;  %v558_v47 = vpop.eup %557 }
 0x15b   : > { %v310_v40 = vsub.f32 %v299_v22, %v309_v37  ;;  %v311_v41 = vsub.f32 %v300_v23, %v309_v37 }
 0x15d   : > { %v312_v42 = vsub.f32 %v310_v40, %v294_v38  ;;  %v313_v43 = vsub.f32 %v311_v41, %v295_v39 }
 0x15f   : > { %v314_v44 = vmul.f32 %v550_v29, %v312_v42  ;;  %v315_v45 = vmul.f32 %v552_v30, %v313_v43 }
 0x161   : > { %v316_v46 = vadd.f32 %v315_v45, %v314_v44 }
 0x163   : > { %317 = vadd.xlane.f32.xlu2 %v316_v46 }
 0x1d6   : > { %v318_v48 = vpop.xlane.xlu2 %317 }
 0x1d7   : > { %v320_v49 = vmul.f32 %v558_v47, %v318_v48 }
 0x1d9   : > { %v322_v50 = vsel %vm321_vm0, %v320_v49, 0.0 }
 0x1da   : > { %323 = vadd.xlane.f32.xlu2 %v322_v50 }
 0x24d   : > { %v324_v51 = vpop.xlane.xlu2 %323 }
 0x24e   : > { %v325_v52 = vrot.slane %v324_v51, 4 }
 0x250   : > { %v326_v53 = vadd.f32 %v325_v52, %v324_v51 }
 0x252   : > { %v327_v54 = vrot.slane %v326_v53, 2 }
 0x254   : > { %v328_v55 = vadd.f32 %v327_v54, %v326_v53 }
 0x256   : > { %v329_v56 = vrot.slane %v328_v55, 1 }
 0x258   : > { %v330_v57 = vadd.f32 %v329_v56, %v328_v55 }
 0x25a   : > { %487 = vpush %v330_v57 }
 0x28b   : > { %s488_s5 = spop %487 }
 0x28c   : > { %v332_v58 = vstv %s488_s5 }
 0x28d   : > { %333 = vst [vmem:[%s265_s30] sm:$0xff] %v332_v58 }
 0x28e   : > { %676 = shalt.err (!%p673_p2)
}
 0x28f   : > { %495 = dma.vmem_to_hbm [thread:$0]  (%p786_p10), %s348_s7, 128, %s350_s29, %s335_s11  }
 0x290 PF: > { %p512_p3 = scmp.ge.s32.totalorder %s719_s15, 2  ;;  %s361_s1 = sand.u32 1, %s707_s12  }
 0x291   : > { %s362_s28 = scalar_lea.sflag [#allocation4], %s361_s1 }
 0x292   : > { %p508_p4 = pnand %p512_p3, %p790_p11 }
 0x294   : > { %p509_p13 = pneg %p508_p4 }
 0x296   : > { %702 = dma.done.wait (%p509_p13), %s362_s28, 128  }
 0x297   : > { %704 = vsyncadd (%p509_p13), %s362_s28, 4294967168  ;;  %s932_s9 = sld [smem:[#allocation12_spill]]  ;;  %p19_p5 = scmp.ge.s32.totalorder %s766_s18, 5  }
 0x298   : > { %s933_s12 = smov %s711_s13  ;;  %s934_s13 = smov %s715_s14 }
 0x299   : > { %s936_s15 = smov %s766_s18  ;;  %21 = sbr.rel (!%p19_p5) target bundleno = 9 (0x9), region = 101 }
 0x29d   : > { %s935_s14 = smov %s932_s9 }
 0x29e   :  { %368 = vsyncpa [#allocation3], 1 }
 0x29f   :  { %370 = vsyncpa [#allocation3 + $0x1], 1 }
 0x2a0   :  { %371 = vsyncpa [#allocation6], 1 }
 0x2a1   :  { %373 = vsyncpa [#allocation6 + $0x1], 1 }
 0x2a2   :  { %374 = vsyncpa [#allocation4], 1 }
 0x2a3   :  { %376 = vsyncpa [#allocation4 + $0x1], 1 }

</bundles_post_ra>
